<compile_context>
chip_gen: v5e
topology: v5e:2x2
jax: 0.10.0
libtpu: 0.0.40
codegen_flags: <defaults>
</compile_context>

<pallas_src>
import functools

import jax
import jax.numpy as jnp
import numpy as np
from jax.experimental import pallas as pl
from jax.experimental.pallas import tpu as pltpu


def _round_up(x, m):
    return ((x + m - 1) // m) * m


# ----------------------------------------------------------------------------
# Pallas kernel 1: tiled matmul (+bias, optional ReLU) on the MXU.
#   x tile (tile_m, K) bf16  @  w (K, Np) bf16  ->  f32 acc, + bias, (ReLU)
# ----------------------------------------------------------------------------
def _matmul_bias_act_kernel(x_ref, w_ref, b_ref, o_ref, *, relu):
    y = jnp.dot(x_ref[...], w_ref[...], preferred_element_type=jnp.float32)
    y = y + b_ref[...]
    if relu:
        y = jnp.maximum(y, 0.0)
    o_ref[...] = y


def matmul_bias_act(x, w, b, *, relu, tile_m=512):
    """(M, K) @ (K, N) + b with optional ReLU.

    Returns (M, Np) f32 with N zero-padded up to a multiple of 128 lanes
    (padded columns are exactly 0).  Tiled over M: each grid step handles
    tile_m rows; axis marked "parallel" for megacore sharding + pipelining."""
    M, K = x.shape
    N = w.shape[1]
    Np = _round_up(N, 128)
    tile_m = min(tile_m, _round_up(M, 8))
    Mp = _round_up(M, tile_m)

    xq = jnp.pad(x.astype(jnp.bfloat16), ((0, Mp - M), (0, 0)))
    wq = jnp.pad(w.astype(jnp.bfloat16), ((0, 0), (0, Np - N)))
    bq = jnp.pad(b.astype(jnp.float32).reshape(1, N), ((0, 0), (0, Np - N)))

    out = pl.pallas_call(
        functools.partial(_matmul_bias_act_kernel, relu=relu),
        out_shape=jax.ShapeDtypeStruct((Mp, Np), jnp.float32),
        grid=(Mp // tile_m,),
        in_specs=[
            pl.BlockSpec((tile_m, K), lambda i: (i, 0)),
            pl.BlockSpec((K, Np), lambda i: (0, 0)),
            pl.BlockSpec((1, Np), lambda i: (0, 0)),
        ],
        out_specs=pl.BlockSpec((tile_m, Np), lambda i: (i, 0)),
        compiler_params=pltpu.CompilerParams(
            dimension_semantics=("parallel",)),
    )(xq, wq, bq)
    return out[:M]


# ----------------------------------------------------------------------------
# im2col glue (channel-last).  Patch flatten order is (dy, dx, c), matching
# weight.transpose(0, 2, 3, 1).reshape(Cout, kh*kw*Cin).
# ----------------------------------------------------------------------------
def _extract_patches_nhwc(x, kh, kw, stride, padding):
    """x: (N, H, W, C) -> (N, Hout, Wout, kh*kw*C)."""
    N, H, W, C = x.shape
    xp = jnp.pad(x, ((0, 0), (padding, padding), (padding, padding), (0, 0)))
    Hout = (H + 2 * padding - kh) // stride + 1
    Wout = (W + 2 * padding - kw) // stride + 1
    slices = []
    for dy in range(kh):
        for dx in range(kw):
            slices.append(
                xp[:, dy:dy + stride * Hout:stride,
                   dx:dx + stride * Wout:stride, :])
    p = jnp.concatenate(slices, axis=-1)        # (N, Hout, Wout, kh*kw*C)
    return p, Hout, Wout


def conv2d_relu_seq(x5, weight, bias, stride, padding, *, tile_m=512):
    """(B, T, Cin, H, W) NCHW-per-frame -> channel-last (B, T, Ho, Wo, Np) f32.
    Np = Cout padded to 128; only the first Cout channels are real (rest 0)."""
    B, T, Cin, H, W = x5.shape
    Cout, _, kh, kw = weight.shape
    x = x5.reshape(B * T, Cin, H, W).transpose(0, 2, 3, 1)      # NHWC
    x = x.astype(jnp.bfloat16)                                  # bf16 im2col
    patches, Ho, Wo = _extract_patches_nhwc(x, kh, kw, stride, padding)
    K = kh * kw * Cin
    wm = weight.transpose(0, 2, 3, 1).reshape(Cout, K).T        # (K, Cout)
    out = matmul_bias_act(patches.reshape(-1, K), wm, bias,
                          relu=True, tile_m=tile_m)
    return out.reshape(B, T, Ho, Wo, out.shape[-1]), Cout


# ----------------------------------------------------------------------------
# Pallas kernel 2: attention over the sequence (Tk) axis for one (batch, q-step)
# grid cell.  Pure elementwise work (matmuls were hoisted into kernel 1).
# ----------------------------------------------------------------------------
def _attention_kernel(qp_ref, kp_ref, v_ref, o_ref):
    # qp_ref: (1, 1,  HW, Cp)  query-side transform projection for (b, i)
    # kp_ref: (1, Tk, HW, Cp)  key-side transform projection + bias for batch b
    # v_ref : (1, Tk, HW, Cp)  value features for batch b (channel-last, padded)
    qp = qp_ref[...][0, 0]                     # (HW, Cp)
    kp = kp_ref[...][0]                        # (Tk, HW, Cp)
    v = v_ref[...][0]                          # (Tk, HW, Cp)

    logits = kp + qp[None, :, :]               # (Tk, HW, Cp)
    m = jnp.max(logits, axis=0, keepdims=True)
    e = jnp.exp(logits - m)
    s = jnp.sum(e, axis=0, keepdims=True)      # >= 1, never zero
    w = e * pl.reciprocal(s, approx=True)      # softmax over Tk (EUP recip)
    out = jnp.sum(w * v, axis=0)               # (HW, Cp)
    o_ref[...] = out[None, None]


# ----------------------------------------------------------------------------
# Full forward (mirrors MultiHeadAttention2D.forward)
# ----------------------------------------------------------------------------
def multi_head_attention_2d(q, k, v, params):
    t_w, t_b = params["t_w"], params["t_b"]
    t_stride, t_pad = params["t_stride"], params["t_pad"]
    Cv_t, C_qk, t_kh, t_kw = t_w.shape

    _q, Cq = conv2d_relu_seq(q, params["q_w"], params["q_b"],
                             params["q_stride"], params["q_pad"])
    _k, Ck = conv2d_relu_seq(k, params["k_w"], params["k_b"],
                             params["k_stride"], params["k_pad"])
    _v, Cv = conv2d_relu_seq(v, params["v_w"], params["v_b"],
                             params["v_stride"], params["v_pad"])
    assert Cv == Cv_t and C_qk == Cq + Ck

    B, Tq, Hq, Wq = _q.shape[:4]
    Tk, Hk, Wk = _k.shape[1:4]
    Tv, Hv, Wv = _v.shape[1:4]
    assert (Hq, Wq) == (Hk, Wk), "q/k conv geometry must match for the concat"

    # transform conv split by linearity: q-side and k-side projections, each
    # computed ONCE (k-side is Tq-invariant -> hoisted out of the query loop).
    wt_q = t_w[:, :Cq].transpose(0, 2, 3, 1).reshape(Cv, t_kh * t_kw * Cq).T
    wt_k = t_w[:, Cq:].transpose(0, 2, 3, 1).reshape(Cv, t_kh * t_kw * Ck).T

    def _proj(feat, C, wT, bias):
        Bf, Tf, Hf, Wf = feat.shape[:4]
        x = feat[..., :C].astype(jnp.bfloat16).reshape(Bf * Tf, Hf, Wf, C)
        p, Ho, Wo = _extract_patches_nhwc(x, t_kh, t_kw, t_stride, t_pad)
        out = matmul_bias_act(p.reshape(-1, t_kh * t_kw * C), wT, bias,
                              relu=False)
        return out.reshape(Bf, Tf, Ho * Wo, out.shape[-1]), Ho, Wo

    q_proj, Ho, Wo = _proj(_q, Cq, wt_q, jnp.zeros((Cv,), jnp.float32))
    k_proj, Ho2, Wo2 = _proj(_k, Ck, wt_k, t_b)      # transform bias folded here
    HW = Ho * Wo
    assert (Ho, Wo) == (Ho2, Wo2)
    assert (Ho, Wo) == (Hv, Wv) and Tk == Tv, (
        "transform/value conv geometry must match for the elementwise product")

    Cp = q_proj.shape[-1]                            # 128-padded channel dim
    assert k_proj.shape[-1] == Cp and _v.shape[-1] == Cp
    v_r = _v.reshape(B, Tv, HW, Cp)

    out = pl.pallas_call(
        _attention_kernel,
        out_shape=jax.ShapeDtypeStruct((B, Tq, HW, Cp), jnp.float32),
        grid=(B, Tq),                                # Tq innermost: kp/v resident
        in_specs=[
            pl.BlockSpec((1, 1, HW, Cp), lambda b, i: (b, i, 0, 0)),
            pl.BlockSpec((1, Tk, HW, Cp), lambda b, i: (b, 0, 0, 0)),
            pl.BlockSpec((1, Tk, HW, Cp), lambda b, i: (b, 0, 0, 0)),
        ],
        out_specs=pl.BlockSpec((1, 1, HW, Cp), lambda b, i: (b, i, 0, 0)),
        compiler_params=pltpu.CompilerParams(
            dimension_semantics=("parallel", "parallel")),
    )(q_proj, k_proj, v_r)

    # (B, Tq, HW, Cp) -> (B, Tq, Cv, Ho, Wo)
    out = out[..., :Cv].reshape(B, Tq, Ho, Wo, Cv)
    return out.transpose(0, 1, 4, 2, 3)


# ----------------------------------------------------------------------------
# Pure-JAX reference (matches the PyTorch forward) for verification
# ----------------------------------------------------------------------------
def _ref_forward(q, k, v, params):
    def conv(x, w, b, stride, pad):
        y = jax.lax.conv_general_dilated(
            x, w, (stride, stride), ((pad, pad), (pad, pad)),
            dimension_numbers=("NCHW", "OIHW", "NCHW"),
            precision=jax.lax.Precision.HIGHEST)
        return y + b[None, :, None, None]

    def conv_seq(x5, w, b, s, p):
        B, T, C, H, W = x5.shape
        y = conv(x5.reshape(B * T, C, H, W), w, b, s, p)
        return y.reshape(B, T, y.shape[1], y.shape[2], y.shape[3])

    _q = jax.nn.relu(conv_seq(q, params["q_w"], params["q_b"],
                              params["q_stride"], params["q_pad"]))
    _k = jax.nn.relu(conv_seq(k, params["k_w"], params["k_b"],
                              params["k_stride"], params["k_pad"]))
    _v = jax.nn.relu(conv_seq(v, params["v_w"], params["v_b"],
                              params["v_stride"], params["v_pad"]))

    outs = []
    for i in range(_q.shape[1]):
        qi = jnp.broadcast_to(
            _q[:, i:i + 1],
            (_q.shape[0], _k.shape[1], _q.shape[2], _q.shape[3], _q.shape[4]))
        w5 = jnp.concatenate([qi, _k], axis=2)
        w5 = conv_seq(w5, params["t_w"], params["t_b"],
                      params["t_stride"], params["t_pad"])
        w5 = jax.nn.softmax(w5, axis=1)
        outs.append(jnp.sum(_v * w5, axis=1, keepdims=True))
    return jnp.concatenate(outs, axis=1)


# ----------------------------------------------------------------------------
def _conv_init(key, cout, cin, kh, kw):
    k1, k2 = jax.random.split(key)
    bound = 1.0 / float(np.sqrt(cin * kh * kw))
    w = jax.random.uniform(k1, (cout, cin, kh, kw), jnp.float32, -bound, bound)
    b = jax.random.uniform(k2, (cout,), jnp.float32, -bound, bound)
    return w, b


if __name__ == "__main__":
    key = jax.random.PRNGKey(0)
    keys = jax.random.split(key, 8)

    # module config (all convs preserve spatial size so the product works)
    B, Tq, Tk = 2, 4, 8
    H = W = 16
    q_in, q_out = 4, 8
    k_in, k_out = 4, 8
    v_in, v_out = 4, 6

    q_w, q_b = _conv_init(keys[0], q_out, q_in, 3, 3)
    k_w, k_b = _conv_init(keys[1], k_out, k_in, 3, 3)
    v_w, v_b = _conv_init(keys[2], v_out, v_in, 3, 3)
    t_w, t_b = _conv_init(keys[3], v_out, q_out + k_out, 3, 3)

    params = dict(
        q_w=q_w, q_b=q_b, q_stride=1, q_pad=1,
        k_w=k_w, k_b=k_b, k_stride=1, k_pad=1,
        v_w=v_w, v_b=v_b, v_stride=1, v_pad=1,
        t_w=t_w, t_b=t_b, t_stride=1, t_pad=1,
    )

    q = jax.random.normal(keys[4], (B, Tq, q_in, H, W), jnp.float32)
    k = jax.random.normal(keys[5], (B, Tk, k_in, H, W), jnp.float32)
    v = jax.random.normal(keys[6], (B, Tk, v_in, H, W), jnp.float32)

    out = jax.block_until_ready(multi_head_attention_2d(q, k, v, params))
    ref = jax.block_until_ready(_ref_forward(q, k, v, params))

    assert out.shape == (B, Tq, v_out, H, W), out.shape
    # bf16 MXU inputs with f32 accumulation -> slightly looser tolerance
    np.testing.assert_allclose(np.asarray(out), np.asarray(ref),
                               rtol=2e-2, atol=2e-2)

    print("KERNEL_OK")
</pallas_src>

<mosaic_0001>
module attributes {stable_mosaic.version = 11 : i64} {
  func.func @_matmul_bias_act_kernel(%arg0: i32, %arg1: memref<512x36xbf16, #tpu.memory_space<vmem>>, %arg2: memref<36x128xbf16, #tpu.memory_space<vmem>>, %arg3: memref<1x128xf32, #tpu.memory_space<vmem>>, %arg4: memref<512x128xf32, #tpu.memory_space<vmem>>) attributes {dimension_semantics = [#tpu.dimension_semantics<parallel>], iteration_bounds = array<i64: 4>, scalar_prefetch = 0 : i64, scratch_operands = 0 : i64, tpu.core_type = #tpu.core_type<tc>, window_params = [{transform_indices = @transform_0, window_bounds = array<i64: 512, 36>}, {pipeline_mode = #tpu.pipeline_mode<synchronous>, transform_indices = @transform_1, window_bounds = array<i64: 36, 128>}, {pipeline_mode = #tpu.pipeline_mode<synchronous>, transform_indices = @transform_2, window_bounds = array<i64: 1, 128>}, {transform_indices = @transform_3, window_bounds = array<i64: 512, 128>}]} {
    %c0 = arith.constant 0 : index
    %c0_0 = arith.constant 0 : index
    %0 = vector.load %arg1[%c0, %c0_0] : memref<512x36xbf16, #tpu.memory_space<vmem>>, vector<512x36xbf16>
    %c0_1 = arith.constant 0 : index
    %c0_2 = arith.constant 0 : index
    %1 = vector.load %arg2[%c0_1, %c0_2] : memref<36x128xbf16, #tpu.memory_space<vmem>>, vector<36x128xbf16>
    %cst = arith.constant dense<0.000000e+00> : vector<512x128xf32>
    %2 = tpu.matmul %0, %1, %cst {dimension_numbers = #tpu.dot_dimension_numbers<[1], [0], [0], [1], [0, 0, 1, 1], [], []>} : vector<512x36xbf16>, vector<36x128xbf16>, vector<512x128xf32> -> vector<512x128xf32>
    %c0_3 = arith.constant 0 : index
    %c0_4 = arith.constant 0 : index
    %3 = vector.load %arg3[%c0_3, %c0_4] : memref<1x128xf32, #tpu.memory_space<vmem>>, vector<1x128xf32>
    %4 = vector.broadcast %3 : vector<1x128xf32> to vector<512x128xf32>
    %5 = arith.addf %2, %4 : vector<512x128xf32>
    %cst_5 = arith.constant 0.000000e+00 : f32
    %6 = vector.broadcast %cst_5 : f32 to vector<512x128xf32>
    %7 = arith.maximumf %5, %6 : vector<512x128xf32>
    %c0_6 = arith.constant 0 : index
    %c0_7 = arith.constant 0 : index
    %8 = vector.load %arg4[%c0_6, %c0_7] : memref<512x128xf32, #tpu.memory_space<vmem>>, vector<512x128xf32>
    tpu.vector_store %arg4[%c0_6, %c0_7], %7 {strides = array<i32>} : memref<512x128xf32, #tpu.memory_space<vmem>>, vector<512x128xf32>,
    return
  }
  func.func @transform_0(%arg0: i32) -> (i32, i32) {
    %c0_i32 = arith.constant 0 : i32
    %c0_i32_0 = arith.constant 0 : i32
    return %arg0, %c0_i32 : i32, i32
  }
  func.func @transform_1(%arg0: i32) -> (i32, i32) {
    %c0_i32 = arith.constant 0 : i32
    %c0_i32_0 = arith.constant 0 : i32
    %c0_i32_1 = arith.constant 0 : i32
    return %c0_i32, %c0_i32_0 : i32, i32
  }
  func.func @transform_2(%arg0: i32) -> (i32, i32) {
    %c0_i32 = arith.constant 0 : i32
    %c0_i32_0 = arith.constant 0 : i32
    %c0_i32_1 = arith.constant 0 : i32
    return %c0_i32, %c0_i32_0 : i32, i32
  }
  func.func @transform_3(%arg0: i32) -> (i32, i32) {
    %c0_i32 = arith.constant 0 : i32
    %c0_i32_0 = arith.constant 0 : i32
    return %arg0, %c0_i32 : i32, i32
  }
}

</mosaic_0001>

<bundles_post_ra>
// kernel: tpu_custom_call.1
= control target key start
LH: loop header
LB: loop body
LE: loop exit
PB: predicated region body
PF: predicated region fallthrough
CT: control target
= control target key end

     0   :  { %8 = vsyncpa [#allocation3], 0  ;;  %s1548_s0 = inlined_call_operand.vmem [shape: bf16[2048,36], index: 0, kind: input, shape index: {}]   ;;  %s1549_s1 = inlined_call_operand.vmem [shape: bf16[36,128], index: 1, kind: input, shape index: {}]   ;;  %s1550_s2 = inlined_call_operand.vmem [shape: f32[1,128], index: 2, kind: input, shape index: {}]   ;;  %s1551_s3 = inlined_call_operand.hbm [shape: f32[2048,128], index: 3, kind: output, shape index: {}]  }
   0x1   :  { %10 = vsyncpa [#allocation3 + $0x1], 0  ;;  %s1249_s12 = smov 0   ;;  %s1251_s13 = smov 0  }
   0x2   :  { %s1253_s14 = smov 0   ;;  %s1255_s15 = smov 0  }
   0x3 LB: > { %s1270_s16 = sadd.s32 4294967295, %s1225_s15   ;;  %s897_s17 = sadd.s32 4294967294, %s1225_s15   ;;  %s1225_s15 = sphi %s1255_s15, %s1557_s15   ;;  %s1221_s14 = sphi %s1253_s14, %s1556_s14   ;;  %s1217_s13 = sphi %s1251_s13, %s1555_s13   ;;  %s1213_s12 = sphi %s1249_s12, %s1554_s12  }
   0x4   : > { %s1274_s18 = sadd.s32 1, %s1225_s15   ;;  %s91_s19 = sadd.s32 1, %s1221_s14 }
   0x5   : > { %s88_s20 = ssub.s32 %s1225_s15, %s1274_s18  ;;  %p101_p0 = scmp.ne.s32.totalorder %s1221_s14, %s1217_s13 }
   0x6   : > { %p89_p1 = scmp.eq.s32.totalorder %s88_s20, 0  ;;  %p102_p2 = scmp.eq.s32.totalorder %s1270_s16, 3 }
   0x7   : > { %p107_p3 = scmp.ne.s32.totalorder %s1217_s13, %s1213_s12  ;;  %p108_p4 = scmp.eq.s32.totalorder %s897_s17, 3 }
   0x8   : > { %s1285_s21 = scalar_select %p89_p1, %s1221_s14, %s91_s19  }
   0x9   : > { %p1287_p5 = por %p102_p2, %p101_p0  ;;  %p1291_p6 = por %p108_p4, %p107_p3 }
   0xa   : > { %p900_p7 = scmp.ge.s32.totalorder %s1225_s15, 1  ;;  %p141_p8 = scmp.lt.s32.totalorder %s1225_s15, 5 }
   0xc   : > { %p142_p9 = pnand %p900_p7, %p141_p8 }
   0xd   : > { %s902_s26 = sshll.u32 (!%p142_p9), %s1270_s16, 6  ;;  %s162_s8 = sand.u32 (!%p142_p9), 1, %s1217_s13  }
   0xe   : > { %145 = sbr.rel (%p142_p9) target bundleno = 298 (0x12a), region = 32  ;;  %p166_p10 = scmp.lt.s32.totalorder (!%p142_p9), %s902_s26, 255 }
   0xf   : > { %s901_s11 = sshll.u32 (!%p142_p9), %s162_s8, 9  ;;  %s1111_s19 = sshll.u32 (!%p142_p9), %s1270_s16, 9 }
  0x10   : > { %s1386_s17 = scalar_lea.vmem (!%p142_p9), [#allocation2], %s901_s11  ;;  %s831_s25 = scalar_lea.hbm (!%p142_p9), %s1551_s3, %s1111_s19 }
  0x11   : > { %s834_s16 = sshll.u32 (!%p142_p9), %s831_s25, 4  ;;  %s820_s27 = scalar_lea.sflag (!%p142_p9), [#allocation3], %s162_s8  ;;  %s835_s16 = int_to_ptr.hbm [resolvable:$true] %s834_s16 }
  0x12   : > { %s1177_s28 = sshra.s32 (!%p142_p9), %s835_s16, 4  ;;  %s1183_s5 = scalar_lea.hbm (!%p142_p9), %s1551_s3, 2048  ;;  %s1178_s28 = int_to_ptr.hbm [resolvable:$true] %s1177_s28 }
  0x13   : > { %v241_v0 = vld [vmem:[%s1549_s1 + $0x10] sm:$0x3]  ;;  %vm518_vm0 = vcmask 1041408   ;;  %s1559_s26 = smov (!%p166_p10, %s902_s26), 255  ;;  %v1110_v4 = vld [vmem:[%s1549_s1 + $0x8] sm:$0xff]  ;;  %v1109_v5 = vld [vmem:[%s1549_s1] sm:$0xff]  ;;  %p1184_p0 = scmp.lt.s32.totalorder %s1178_s28, %s1551_s3 }
  0x14   : > { %v415_v1 = vunpack.c.l.b16 %v241_v0  ;;  %s903_s29 = sshll.u32 %s1559_s26, 2  ;;  %vm421_vm1 = vcmask 293888   ;;  %v1380_v38 = vld [vmem:[%s1550_s2] ss:$0 sm:$0xff]  ;;  %s832_s26 = sshll.u32 %s1386_s17, 4  ;;  %s833_s26 = int_to_ptr.vmem [resolvable:$true] %s832_s26 }
  0x15   : > { %s1310_s7 = scalar_lea.vmem %s1548_s0, %s903_s29  ;;  %s1179_s29 = scalar_lea.hbm %s1178_s28, 512 }
  0x16   : > { %v418_v2 = vpack.c.b16 %v415_v1, %v415_v1  ;;  %v1077_v6 = vld [vmem:[%s1310_s7] sm:$0xff]  ;;  %v1078_v10 = vld [vmem:[%s1310_s7 + $0x8] sm:$0xff]  ;;  %v1079_v14 = vld [vmem:[%s1310_s7 + $0x10] sm:$0xff]  ;;  %p1180_p11 = scmp.ne.s32.totalorder %s1178_s28, %s1179_s29  ;;  %p1185_p1 = scmp.lt.s32.totalorder %s1183_s5, %s1179_s29 }
  0x17   : > { %v1085_v7 = vld [vmem:[%s1310_s7 + $0x40] sm:$0xff]  ;;  %v1086_v11 = vld [vmem:[%s1310_s7 + $0x48] sm:$0xff]  ;;  %v1087_v15 = vld [vmem:[%s1310_s7 + $0x50] sm:$0xff] }
  0x18   : > { %v520_v3 = vsel %vm518_vm0, %v418_v2, 0  ;;  %v1093_v8 = vld [vmem:[%s1310_s7 + $0x80] sm:$0xff]  ;;  %v1094_v12 = vld [vmem:[%s1310_s7 + $0x88] sm:$0xff]  ;;  %v1095_v16 = vld [vmem:[%s1310_s7 + $0x90] sm:$0xff]  ;;  %p1181_p12 = pnand %p1180_p11, %p1287_p5  ;;  %p1186_p2 = por %p1185_p1, %p1184_p0 }
  0x19   : > { %527 = vmatpush.bf16.msra.mxu0 %v520_v3  ;;  %1112 = vmatpush.bf16.msra.mxu1 %v520_v3  ;;  %v1101_v9 = vld [vmem:[%s1310_s7 + $0xc0] sm:$0xff]  ;;  %v1102_v13 = vld [vmem:[%s1310_s7 + $0xc8] sm:$0xff]  ;;  %v1103_v17 = vld [vmem:[%s1310_s7 + $0xd0] sm:$0xff] }
  0x1a   : > { %1113 = vmatpush.bf16.msra.mxu2 %v520_v3  ;;  %1114 = vmatpush.bf16.msra.mxu3 %v520_v3  ;;  %v1080_v18 = vld [vmem:[%s1310_s7 + $0x18] sm:$0xff]  ;;  %v1081_v22 = vld [vmem:[%s1310_s7 + $0x20] sm:$0xff]  ;;  %v1082_v26 = vld [vmem:[%s1310_s7 + $0x28] sm:$0xff]  ;;  %p1182_p13 = pneg %p1181_p12 }
  0x1b   : > { %v1088_v19 = vld [vmem:[%s1310_s7 + $0x58] sm:$0xff]  ;;  %v1089_v23 = vld [vmem:[%s1310_s7 + $0x60] sm:$0xff]  ;;  %v1090_v27 = vld [vmem:[%s1310_s7 + $0x68] sm:$0xff] }
  0x1c   : > { %v1096_v20 = vld [vmem:[%s1310_s7 + $0x98] sm:$0xff]  ;;  %v1097_v24 = vld [vmem:[%s1310_s7 + $0xa0] sm:$0xff]  ;;  %v1098_v28 = vld [vmem:[%s1310_s7 + $0xa8] sm:$0xff]  ;;  %p1187_p3 = pnand %p1186_p2, %p1182_p13 }
  0x1d   : > { %528 = vmatpush.bf16.msra.mxu0 %v1110_v4  ;;  %1115 = vmatpush.bf16.msra.mxu1 %v1110_v4  ;;  %v1104_v21 = vld [vmem:[%s1310_s7 + $0xd8] sm:$0xff]  ;;  %v1105_v25 = vld [vmem:[%s1310_s7 + $0xe0] sm:$0xff]  ;;  %v1106_v29 = vld [vmem:[%s1310_s7 + $0xe8] sm:$0xff] }
  0x1e   : > { %1116 = vmatpush.bf16.msra.mxu2 %v1110_v4  ;;  %1117 = vmatpush.bf16.msra.mxu3 %v1110_v4  ;;  %v1083_v30 = vld [vmem:[%s1310_s7 + $0x30] sm:$0xff]  ;;  %v1084_v34 = vld [vmem:[%s1310_s7 + $0x38] sm:$0xff] }
  0x1f   : > { %v1091_v31 = vld [vmem:[%s1310_s7 + $0x70] sm:$0xff]  ;;  %v1092_v35 = vld [vmem:[%s1310_s7 + $0x78] sm:$0xff] }
  0x20   : > { %v1099_v32 = vld [vmem:[%s1310_s7 + $0xb0] sm:$0xff]  ;;  %v1100_v36 = vld [vmem:[%s1310_s7 + $0xb8] sm:$0xff] }
  0x21   : > { %529 = vmatpush.bf16.msra.mxu0 %v1109_v5  ;;  %1118 = vmatpush.bf16.msra.mxu1 %v1109_v5  ;;  %v1107_v33 = vld [vmem:[%s1310_s7 + $0xf0] sm:$0xff]  ;;  %v1108_v37 = vld [vmem:[%s1310_s7 + $0xf8] sm:$0xff] }
  0x22   : > { %1119 = vmatpush.bf16.msra.mxu2 %v1109_v5  ;;  %1120 = vmatpush.bf16.msra.mxu3 %v1109_v5 }
  0x24   : > { %1040 = vmatmul.msk.bf16.vlgmr.msra.gmra.mxu0 %vm421_vm1, %v1077_v6  ;;  %1048 = vmatmul.msk.bf16.vlgmr.msra.gmra.mxu1 %vm421_vm1, %v1085_v7 }
  0x25   : > { %1056 = vmatmul.msk.bf16.vlgmr.msra.gmra.mxu2 %vm421_vm1, %v1093_v8  ;;  %1064 = vmatmul.msk.bf16.vlgmr.msra.gmra.mxu3 %vm421_vm1, %v1101_v9 }
  0x34   : > { %1041 = vmatmul.msk.bf16.gmra.mxu0 %vm421_vm1, %v1078_v10  ;;  %1049 = vmatmul.msk.bf16.gmra.mxu1 %vm421_vm1, %v1086_v11 }
  0x35   : > { %1057 = vmatmul.msk.bf16.gmra.mxu2 %vm421_vm1, %v1094_v12  ;;  %1065 = vmatmul.msk.bf16.gmra.mxu3 %vm421_vm1, %v1102_v13 }
  0x44   : > { %1042 = vmatmul.msk.bf16.gmra.mxu0 %vm421_vm1, %v1079_v14  ;;  %1050 = vmatmul.msk.bf16.gmra.mxu1 %vm421_vm1, %v1087_v15 }
  0x45   : > { %1058 = vmatmul.msk.bf16.gmra.mxu2 %vm421_vm1, %v1095_v16  ;;  %1066 = vmatmul.msk.bf16.gmra.mxu3 %vm421_vm1, %v1103_v17 }
  0x54   : > { %1043 = vmatmul.msk.bf16.gmra.mxu0 %vm421_vm1, %v1080_v18  ;;  %1051 = vmatmul.msk.bf16.gmra.mxu1 %vm421_vm1, %v1088_v19 }
  0x55   : > { %1059 = vmatmul.msk.bf16.gmra.mxu2 %vm421_vm1, %v1096_v20  ;;  %1067 = vmatmul.msk.bf16.gmra.mxu3 %vm421_vm1, %v1104_v21 }
  0x64   : > { %1044 = vmatmul.msk.bf16.gmra.mxu0 %vm421_vm1, %v1081_v22  ;;  %1052 = vmatmul.msk.bf16.gmra.mxu1 %vm421_vm1, %v1089_v23 }
  0x65   : > { %1060 = vmatmul.msk.bf16.gmra.mxu2 %vm421_vm1, %v1097_v24  ;;  %1068 = vmatmul.msk.bf16.gmra.mxu3 %vm421_vm1, %v1105_v25 }
  0x74   : > { %1045 = vmatmul.msk.bf16.gmra.mxu0 %vm421_vm1, %v1082_v26  ;;  %1053 = vmatmul.msk.bf16.gmra.mxu1 %vm421_vm1, %v1090_v27 }
  0x75   : > { %1061 = vmatmul.msk.bf16.gmra.mxu2 %vm421_vm1, %v1098_v28  ;;  %1069 = vmatmul.msk.bf16.gmra.mxu3 %vm421_vm1, %v1106_v29 }
  0x84   : > { %1046 = vmatmul.msk.bf16.gmra.mxu0 %vm421_vm1, %v1083_v30  ;;  %1054 = vmatmul.msk.bf16.gmra.mxu1 %vm421_vm1, %v1091_v31 }
  0x85   : > { %1062 = vmatmul.msk.bf16.gmra.mxu2 %vm421_vm1, %v1099_v32  ;;  %1070 = vmatmul.msk.bf16.gmra.mxu3 %vm421_vm1, %v1107_v33 }
  0x94   : > { %1047 = vmatmul.msk.bf16.gmra.mxu0 %vm421_vm1, %v1084_v34  ;;  %1055 = vmatmul.msk.bf16.gmra.mxu1 %vm421_vm1, %v1092_v35 }
  0x95   : > { %1063 = vmatmul.msk.bf16.gmra.mxu2 %vm421_vm1, %v1100_v36  ;;  %1071 = vmatmul.msk.bf16.gmra.mxu3 %vm421_vm1, %v1108_v37 }
  0xa1   : > { %v531_v39 = vpop.f32.mrf.mxu0  ;;  %v571_v40 = vpop.f32.mrf.mxu1 }
  0xa2   : > { %v532_v41 = vadd.f32 %v1380_v38, %v531_v39  ;;  %v572_v42 = vadd.f32 %v1380_v38, %v571_v40 }
  0xa4   : > { %v691_v43 = vmax.f32 %v532_v41, 0.0  ;;  %v707_v44 = vmax.f32 %v572_v42, 0.0 }
  0xa6   : > { %755 = vst [vmem:[%s1386_s17] sm:$0xff] %v691_v43 }
  0xa7   : > { %771 = vst [vmem:[%s1386_s17 + $0x80] sm:$0xff] %v707_v44 }
  0xa8   : > { %v611_v45 = vpop.f32.mrf.mxu2  ;;  %v651_v46 = vpop.f32.mrf.mxu3 }
  0xa9   : > { %v612_v47 = vadd.f32 %v1380_v38, %v611_v45  ;;  %v652_v48 = vadd.f32 %v1380_v38, %v651_v46  ;;  %v533_v49 = vpop.f32.mrf.mxu0  ;;  %v573_v50 = vpop.f32.mrf.mxu1 }
  0xaa   : > { %v534_v51 = vadd.f32 %v1380_v38, %v533_v49  ;;  %v574_v52 = vadd.f32 %v1380_v38, %v573_v50 }
  0xab   : > { %v723_v53 = vmax.f32 %v612_v47, 0.0  ;;  %v739_v54 = vmax.f32 %v652_v48, 0.0 }
  0xac   : > { %v692_v55 = vmax.f32 %v534_v51, 0.0  ;;  %v708_v56 = vmax.f32 %v574_v52, 0.0 }
  0xad   : > { %787 = vst [vmem:[%s1386_s17 + $0x100] sm:$0xff] %v723_v53 }
  0xae   : > { %803 = vst [vmem:[%s1386_s17 + $0x180] sm:$0xff] %v739_v54 }
  0xaf   : > { %756 = vst [vmem:[%s1386_s17 + $0x8] sm:$0xff] %v692_v55 }
  0xb0   : > { %772 = vst [vmem:[%s1386_s17 + $0x88] sm:$0xff] %v708_v56  ;;  %v613_v57 = vpop.f32.mrf.mxu2  ;;  %v653_v58 = vpop.f32.mrf.mxu3 }
  0xb1   : > { %v614_v59 = vadd.f32 %v1380_v38, %v613_v57  ;;  %v654_v60 = vadd.f32 %v1380_v38, %v653_v58  ;;  %v536_v61 = vpop.f32.mrf.mxu0  ;;  %v576_v62 = vpop.f32.mrf.mxu1 }
  0xb2   : > { %v537_v63 = vadd.f32 %v1380_v38, %v536_v61  ;;  %v577_v0 = vadd.f32 %v1380_v38, %v576_v62 }
  0xb3   : > { %v724_v1 = vmax.f32 %v614_v59, 0.0  ;;  %v740_v2 = vmax.f32 %v654_v60, 0.0 }
  0xb4   : > { %v693_v3 = vmax.f32 %v537_v63, 0.0  ;;  %v709_v4 = vmax.f32 %v577_v0, 0.0 }
  0xb5   : > { %788 = vst [vmem:[%s1386_s17 + $0x108] sm:$0xff] %v724_v1 }
  0xb6   : > { %804 = vst [vmem:[%s1386_s17 + $0x188] sm:$0xff] %v740_v2 }
  0xb7   : > { %757 = vst [vmem:[%s1386_s17 + $0x10] sm:$0xff] %v693_v3 }
  0xb8   : > { %773 = vst [vmem:[%s1386_s17 + $0x90] sm:$0xff] %v709_v4  ;;  %v616_v5 = vpop.f32.mrf.mxu2  ;;  %v656_v6 = vpop.f32.mrf.mxu3 }
  0xb9   : > { %v617_v7 = vadd.f32 %v1380_v38, %v616_v5  ;;  %v657_v8 = vadd.f32 %v1380_v38, %v656_v6  ;;  %v538_v9 = vpop.f32.mrf.mxu0  ;;  %v578_v10 = vpop.f32.mrf.mxu1 }
  0xba   : > { %v539_v11 = vadd.f32 %v1380_v38, %v538_v9  ;;  %v579_v12 = vadd.f32 %v1380_v38, %v578_v10 }
  0xbb   : > { %v725_v13 = vmax.f32 %v617_v7, 0.0  ;;  %v741_v14 = vmax.f32 %v657_v8, 0.0 }
  0xbc   : > { %v694_v15 = vmax.f32 %v539_v11, 0.0  ;;  %v710_v16 = vmax.f32 %v579_v12, 0.0 }
  0xbd   : > { %789 = vst [vmem:[%s1386_s17 + $0x110] sm:$0xff] %v725_v13 }
  0xbe   : > { %805 = vst [vmem:[%s1386_s17 + $0x190] sm:$0xff] %v741_v14 }
  0xbf   : > { %758 = vst [vmem:[%s1386_s17 + $0x18] sm:$0xff] %v694_v15 }
  0xc0   : > { %774 = vst [vmem:[%s1386_s17 + $0x98] sm:$0xff] %v710_v16  ;;  %v618_v17 = vpop.f32.mrf.mxu2  ;;  %v658_v18 = vpop.f32.mrf.mxu3 }
  0xc1   : > { %v619_v19 = vadd.f32 %v1380_v38, %v618_v17  ;;  %v659_v20 = vadd.f32 %v1380_v38, %v658_v18  ;;  %v541_v21 = vpop.f32.mrf.mxu0  ;;  %v581_v22 = vpop.f32.mrf.mxu1 }
  0xc2   : > { %v542_v23 = vadd.f32 %v1380_v38, %v541_v21  ;;  %v582_v24 = vadd.f32 %v1380_v38, %v581_v22 }
  0xc3   : > { %v726_v25 = vmax.f32 %v619_v19, 0.0  ;;  %v742_v26 = vmax.f32 %v659_v20, 0.0 }
  0xc4   : > { %v695_v27 = vmax.f32 %v542_v23, 0.0  ;;  %v711_v28 = vmax.f32 %v582_v24, 0.0 }
  0xc5   : > { %790 = vst [vmem:[%s1386_s17 + $0x118] sm:$0xff] %v726_v25 }
  0xc6   : > { %806 = vst [vmem:[%s1386_s17 + $0x198] sm:$0xff] %v742_v26 }
  0xc7   : > { %759 = vst [vmem:[%s1386_s17 + $0x20] sm:$0xff] %v695_v27 }
  0xc8   : > { %775 = vst [vmem:[%s1386_s17 + $0xa0] sm:$0xff] %v711_v28  ;;  %v621_v29 = vpop.f32.mrf.mxu2  ;;  %v661_v30 = vpop.f32.mrf.mxu3 }
  0xc9   : > { %v622_v31 = vadd.f32 %v1380_v38, %v621_v29  ;;  %v662_v32 = vadd.f32 %v1380_v38, %v661_v30  ;;  %v543_v33 = vpop.f32.mrf.mxu0  ;;  %v583_v34 = vpop.f32.mrf.mxu1 }
  0xca   : > { %v544_v35 = vadd.f32 %v1380_v38, %v543_v33  ;;  %v584_v36 = vadd.f32 %v1380_v38, %v583_v34 }
  0xcb   : > { %v727_v37 = vmax.f32 %v622_v31, 0.0  ;;  %v743_v39 = vmax.f32 %v662_v32, 0.0 }
  0xcc   : > { %v696_v40 = vmax.f32 %v544_v35, 0.0  ;;  %v712_v41 = vmax.f32 %v584_v36, 0.0 }
  0xcd   : > { %791 = vst [vmem:[%s1386_s17 + $0x120] sm:$0xff] %v727_v37 }
  0xce   : > { %807 = vst [vmem:[%s1386_s17 + $0x1a0] sm:$0xff] %v743_v39 }
  0xcf   : > { %760 = vst [vmem:[%s1386_s17 + $0x28] sm:$0xff] %v696_v40 }
  0xd0   : > { %776 = vst [vmem:[%s1386_s17 + $0xa8] sm:$0xff] %v712_v41  ;;  %v623_v42 = vpop.f32.mrf.mxu2  ;;  %v663_v43 = vpop.f32.mrf.mxu3 }
  0xd1   : > { %v624_v44 = vadd.f32 %v1380_v38, %v623_v42  ;;  %v664_v45 = vadd.f32 %v1380_v38, %v663_v43  ;;  %v546_v46 = vpop.f32.mrf.mxu0  ;;  %v586_v47 = vpop.f32.mrf.mxu1 }
  0xd2   : > { %v547_v48 = vadd.f32 %v1380_v38, %v546_v46  ;;  %v587_v49 = vadd.f32 %v1380_v38, %v586_v47 }
  0xd3   : > { %v728_v50 = vmax.f32 %v624_v44, 0.0  ;;  %v744_v51 = vmax.f32 %v664_v45, 0.0 }
  0xd4   : > { %v697_v52 = vmax.f32 %v547_v48, 0.0  ;;  %v713_v53 = vmax.f32 %v587_v49, 0.0 }
  0xd5   : > { %792 = vst [vmem:[%s1386_s17 + $0x128] sm:$0xff] %v728_v50 }
  0xd6   : > { %808 = vst [vmem:[%s1386_s17 + $0x1a8] sm:$0xff] %v744_v51 }
  0xd7   : > { %761 = vst [vmem:[%s1386_s17 + $0x30] sm:$0xff] %v697_v52 }
  0xd8   : > { %777 = vst [vmem:[%s1386_s17 + $0xb0] sm:$0xff] %v713_v53  ;;  %v626_v54 = vpop.f32.mrf.mxu2  ;;  %v666_v55 = vpop.f32.mrf.mxu3 }
  0xd9   : > { %v627_v56 = vadd.f32 %v1380_v38, %v626_v54  ;;  %v667_v57 = vadd.f32 %v1380_v38, %v666_v55  ;;  %v548_v58 = vpop.f32.mrf.mxu0  ;;  %v588_v59 = vpop.f32.mrf.mxu1 }
  0xda   : > { %v549_v60 = vadd.f32 %v1380_v38, %v548_v58  ;;  %v589_v61 = vadd.f32 %v1380_v38, %v588_v59 }
  0xdb   : > { %v729_v62 = vmax.f32 %v627_v56, 0.0  ;;  %v745_v63 = vmax.f32 %v667_v57, 0.0 }
  0xdc   : > { %v698_v0 = vmax.f32 %v549_v60, 0.0  ;;  %v714_v1 = vmax.f32 %v589_v61, 0.0 }
  0xdd   : > { %793 = vst [vmem:[%s1386_s17 + $0x130] sm:$0xff] %v729_v62 }
  0xde   : > { %809 = vst [vmem:[%s1386_s17 + $0x1b0] sm:$0xff] %v745_v63 }
  0xdf   : > { %762 = vst [vmem:[%s1386_s17 + $0x38] sm:$0xff] %v698_v0 }
  0xe0   : > { %778 = vst [vmem:[%s1386_s17 + $0xb8] sm:$0xff] %v714_v1  ;;  %v628_v2 = vpop.f32.mrf.mxu2  ;;  %v668_v3 = vpop.f32.mrf.mxu3 }
  0xe1   : > { %v629_v4 = vadd.f32 %v1380_v38, %v628_v2  ;;  %v669_v5 = vadd.f32 %v1380_v38, %v668_v3  ;;  %v551_v6 = vpop.f32.mrf.mxu0  ;;  %v591_v7 = vpop.f32.mrf.mxu1 }
  0xe2   : > { %v552_v8 = vadd.f32 %v1380_v38, %v551_v6  ;;  %v592_v9 = vadd.f32 %v1380_v38, %v591_v7 }
  0xe3   : > { %v730_v10 = vmax.f32 %v629_v4, 0.0  ;;  %v746_v11 = vmax.f32 %v669_v5, 0.0 }
  0xe4   : > { %v699_v12 = vmax.f32 %v552_v8, 0.0  ;;  %v715_v13 = vmax.f32 %v592_v9, 0.0 }
  0xe5   : > { %794 = vst [vmem:[%s1386_s17 + $0x138] sm:$0xff] %v730_v10 }
  0xe6   : > { %810 = vst [vmem:[%s1386_s17 + $0x1b8] sm:$0xff] %v746_v11 }
  0xe7   : > { %763 = vst [vmem:[%s1386_s17 + $0x40] sm:$0xff] %v699_v12 }
  0xe8   : > { %779 = vst [vmem:[%s1386_s17 + $0xc0] sm:$0xff] %v715_v13  ;;  %v631_v14 = vpop.f32.mrf.mxu2  ;;  %v671_v15 = vpop.f32.mrf.mxu3 }
  0xe9   : > { %v632_v16 = vadd.f32 %v1380_v38, %v631_v14  ;;  %v672_v17 = vadd.f32 %v1380_v38, %v671_v15  ;;  %v553_v18 = vpop.f32.mrf.mxu0  ;;  %v593_v19 = vpop.f32.mrf.mxu1 }
  0xea   : > { %v554_v20 = vadd.f32 %v1380_v38, %v553_v18  ;;  %v594_v21 = vadd.f32 %v1380_v38, %v593_v19 }
  0xeb   : > { %v731_v22 = vmax.f32 %v632_v16, 0.0  ;;  %v747_v23 = vmax.f32 %v672_v17, 0.0 }
  0xec   : > { %v700_v24 = vmax.f32 %v554_v20, 0.0  ;;  %v716_v25 = vmax.f32 %v594_v21, 0.0 }
  0xed   : > { %795 = vst [vmem:[%s1386_s17 + $0x140] sm:$0xff] %v731_v22 }
  0xee   : > { %811 = vst [vmem:[%s1386_s17 + $0x1c0] sm:$0xff] %v747_v23 }
  0xef   : > { %764 = vst [vmem:[%s1386_s17 + $0x48] sm:$0xff] %v700_v24 }
  0xf0   : > { %780 = vst [vmem:[%s1386_s17 + $0xc8] sm:$0xff] %v716_v25  ;;  %v633_v26 = vpop.f32.mrf.mxu2  ;;  %v673_v27 = vpop.f32.mrf.mxu3 }
  0xf1   : > { %v634_v28 = vadd.f32 %v1380_v38, %v633_v26  ;;  %v674_v29 = vadd.f32 %v1380_v38, %v673_v27  ;;  %v556_v30 = vpop.f32.mrf.mxu0  ;;  %v596_v31 = vpop.f32.mrf.mxu1 }
  0xf2   : > { %v557_v32 = vadd.f32 %v1380_v38, %v556_v30  ;;  %v597_v33 = vadd.f32 %v1380_v38, %v596_v31 }
  0xf3   : > { %v732_v34 = vmax.f32 %v634_v28, 0.0  ;;  %v748_v35 = vmax.f32 %v674_v29, 0.0 }
  0xf4   : > { %v701_v36 = vmax.f32 %v557_v32, 0.0  ;;  %v717_v37 = vmax.f32 %v597_v33, 0.0 }
  0xf5   : > { %796 = vst [vmem:[%s1386_s17 + $0x148] sm:$0xff] %v732_v34 }
  0xf6   : > { %812 = vst [vmem:[%s1386_s17 + $0x1c8] sm:$0xff] %v748_v35 }
  0xf7   : > { %765 = vst [vmem:[%s1386_s17 + $0x50] sm:$0xff] %v701_v36 }
  0xf8   : > { %781 = vst [vmem:[%s1386_s17 + $0xd0] sm:$0xff] %v717_v37  ;;  %v636_v39 = vpop.f32.mrf.mxu2  ;;  %v676_v40 = vpop.f32.mrf.mxu3 }
  0xf9   : > { %v637_v41 = vadd.f32 %v1380_v38, %v636_v39  ;;  %v677_v42 = vadd.f32 %v1380_v38, %v676_v40  ;;  %v558_v43 = vpop.f32.mrf.mxu0  ;;  %v598_v44 = vpop.f32.mrf.mxu1 }
  0xfa   : > { %v559_v45 = vadd.f32 %v1380_v38, %v558_v43  ;;  %v599_v46 = vadd.f32 %v1380_v38, %v598_v44 }
  0xfb   : > { %v733_v47 = vmax.f32 %v637_v41, 0.0  ;;  %v749_v48 = vmax.f32 %v677_v42, 0.0 }
  0xfc   : > { %v702_v49 = vmax.f32 %v559_v45, 0.0  ;;  %v718_v50 = vmax.f32 %v599_v46, 0.0 }
  0xfd   : > { %797 = vst [vmem:[%s1386_s17 + $0x150] sm:$0xff] %v733_v47 }
  0xfe   : > { %813 = vst [vmem:[%s1386_s17 + $0x1d0] sm:$0xff] %v749_v48 }
  0xff   : > { %766 = vst [vmem:[%s1386_s17 + $0x58] sm:$0xff] %v702_v49 }
 0x100   : > { %782 = vst [vmem:[%s1386_s17 + $0xd8] sm:$0xff] %v718_v50  ;;  %v638_v51 = vpop.f32.mrf.mxu2  ;;  %v678_v52 = vpop.f32.mrf.mxu3 }
 0x101   : > { %v639_v53 = vadd.f32 %v1380_v38, %v638_v51  ;;  %v679_v54 = vadd.f32 %v1380_v38, %v678_v52  ;;  %v561_v55 = vpop.f32.mrf.mxu0  ;;  %v601_v56 = vpop.f32.mrf.mxu1 }
 0x102   : > { %v562_v57 = vadd.f32 %v1380_v38, %v561_v55  ;;  %v602_v58 = vadd.f32 %v1380_v38, %v601_v56 }
 0x103   : > { %v734_v59 = vmax.f32 %v639_v53, 0.0  ;;  %v750_v60 = vmax.f32 %v679_v54, 0.0 }
 0x104   : > { %v703_v61 = vmax.f32 %v562_v57, 0.0  ;;  %v719_v62 = vmax.f32 %v602_v58, 0.0 }
 0x105   : > { %798 = vst [vmem:[%s1386_s17 + $0x158] sm:$0xff] %v734_v59 }
 0x106   : > { %814 = vst [vmem:[%s1386_s17 + $0x1d8] sm:$0xff] %v750_v60 }
 0x107   : > { %767 = vst [vmem:[%s1386_s17 + $0x60] sm:$0xff] %v703_v61 }
 0x108   : > { %783 = vst [vmem:[%s1386_s17 + $0xe0] sm:$0xff] %v719_v62  ;;  %v641_v63 = vpop.f32.mrf.mxu2  ;;  %v681_v0 = vpop.f32.mrf.mxu3 }
 0x109   : > { %v642_v1 = vadd.f32 %v1380_v38, %v641_v63  ;;  %v682_v2 = vadd.f32 %v1380_v38, %v681_v0  ;;  %v563_v3 = vpop.f32.mrf.mxu0  ;;  %v603_v4 = vpop.f32.mrf.mxu1 }
 0x10a   : > { %v564_v5 = vadd.f32 %v1380_v38, %v563_v3  ;;  %v604_v6 = vadd.f32 %v1380_v38, %v603_v4 }
 0x10b   : > { %v735_v7 = vmax.f32 %v642_v1, 0.0  ;;  %v751_v8 = vmax.f32 %v682_v2, 0.0 }
 0x10c   : > { %v704_v9 = vmax.f32 %v564_v5, 0.0  ;;  %v720_v10 = vmax.f32 %v604_v6, 0.0 }
 0x10d   : > { %799 = vst [vmem:[%s1386_s17 + $0x160] sm:$0xff] %v735_v7 }
 0x10e   : > { %815 = vst [vmem:[%s1386_s17 + $0x1e0] sm:$0xff] %v751_v8 }
 0x10f   : > { %768 = vst [vmem:[%s1386_s17 + $0x68] sm:$0xff] %v704_v9 }
 0x110   : > { %784 = vst [vmem:[%s1386_s17 + $0xe8] sm:$0xff] %v720_v10  ;;  %v643_v11 = vpop.f32.mrf.mxu2  ;;  %v683_v12 = vpop.f32.mrf.mxu3 }
 0x111   : > { %v644_v13 = vadd.f32 %v1380_v38, %v643_v11  ;;  %v684_v14 = vadd.f32 %v1380_v38, %v683_v12  ;;  %v566_v15 = vpop.f32.mrf.mxu0  ;;  %v606_v16 = vpop.f32.mrf.mxu1 }
 0x112   : > { %v567_v17 = vadd.f32 %v1380_v38, %v566_v15  ;;  %v607_v18 = vadd.f32 %v1380_v38, %v606_v16 }
 0x113   : > { %v736_v19 = vmax.f32 %v644_v13, 0.0  ;;  %v752_v20 = vmax.f32 %v684_v14, 0.0 }
 0x114   : > { %v705_v21 = vmax.f32 %v567_v17, 0.0  ;;  %v721_v22 = vmax.f32 %v607_v18, 0.0 }
 0x115   : > { %800 = vst [vmem:[%s1386_s17 + $0x168] sm:$0xff] %v736_v19 }
 0x116   : > { %816 = vst [vmem:[%s1386_s17 + $0x1e8] sm:$0xff] %v752_v20 }
 0x117   : > { %769 = vst [vmem:[%s1386_s17 + $0x70] sm:$0xff] %v705_v21 }
 0x118   : > { %785 = vst [vmem:[%s1386_s17 + $0xf0] sm:$0xff] %v721_v22  ;;  %v646_v23 = vpop.f32.mrf.mxu2  ;;  %v686_v24 = vpop.f32.mrf.mxu3 }
 0x119   : > { %v647_v25 = vadd.f32 %v1380_v38, %v646_v23  ;;  %v687_v26 = vadd.f32 %v1380_v38, %v686_v24  ;;  %v568_v27 = vpop.f32.mrf.mxu0  ;;  %v608_v28 = vpop.f32.mrf.mxu1 }
 0x11a   : > { %v569_v29 = vadd.f32 %v1380_v38, %v568_v27  ;;  %v609_v30 = vadd.f32 %v1380_v38, %v608_v28 }
 0x11b   : > { %v737_v31 = vmax.f32 %v647_v25, 0.0  ;;  %v753_v32 = vmax.f32 %v687_v26, 0.0 }
 0x11c   : > { %v706_v33 = vmax.f32 %v569_v29, 0.0  ;;  %v722_v34 = vmax.f32 %v609_v30, 0.0 }
 0x11d   : > { %801 = vst [vmem:[%s1386_s17 + $0x170] sm:$0xff] %v737_v31 }
 0x11e   : > { %817 = vst [vmem:[%s1386_s17 + $0x1f0] sm:$0xff] %v753_v32 }
 0x11f   : > { %770 = vst [vmem:[%s1386_s17 + $0x78] sm:$0xff] %v706_v33 }
 0x120   : > { %786 = vst [vmem:[%s1386_s17 + $0xf8] sm:$0xff] %v722_v34  ;;  %v648_v35 = vpop.f32.mrf.mxu2  ;;  %v688_v36 = vpop.f32.mrf.mxu3 }
 0x121   : > { %v649_v37 = vadd.f32 %v1380_v38, %v648_v35  ;;  %v689_v39 = vadd.f32 %v1380_v38, %v688_v36 }
 0x123   : > { %v738_v40 = vmax.f32 %v649_v37, 0.0  ;;  %v754_v41 = vmax.f32 %v689_v39, 0.0 }
 0x125   : > { %802 = vst [vmem:[%s1386_s17 + $0x178] sm:$0xff] %v738_v40 }
 0x126   : > { %818 = vst [vmem:[%s1386_s17 + $0x1f8] sm:$0xff] %v754_v41 }
 0x127   : > { %1190 = shalt.err (!%p1187_p3)
}
 0x128   : > { %s1227_s8 = smov 128   ;;  %s1228_s9 = smov 8  }
 0x129   : > { %1121 = dma.vmem_to_hbm [thread:$0]  (%p1287_p5), %s833_s26, 8192, %s835_s16, %s820_s27, %s1227_s8, %s1227_s8, %s1228_s9  }
 0x12a PF: > { %p1127_p4 = scmp.ge.s32.totalorder %s1225_s15, 2  ;;  %s849_s10 = sand.u32 1, %s1213_s12  }
 0x12b   : > { %s850_s11 = scalar_lea.sflag [#allocation3], %s849_s10 }
 0x12c   : > { %p1124_p7 = pnand %p1127_p4, %p1291_p6 }
 0x12e   : > { %p1125_p8 = pneg %p1124_p7 }
 0x130   : > { %1208 = dma.done.wait (%p1125_p8), %s850_s11, 8192  }
 0x131   : > { %1210 = vsyncadd (%p1125_p8), %s850_s11, 4294959104  ;;  %p13_p9 = scmp.ge.s32.totalorder %s1274_s18, 6   ;;  %s1554_s12 = smov %s1217_s13 }
 0x132   : > { %s1555_s13 = smov %s1221_s14  ;;  %s1556_s14 = smov %s1285_s21 }
 0x133   : > { %s1557_s15 = smov %s1274_s18  ;;  %15 = sbr.rel (!%p13_p9) target bundleno = 3 (0x3), region = 67 }
 0x138   :  { %856 = vsyncpa [#allocation3], 1 }
 0x139   :  { %858 = vsyncpa [#allocation3 + $0x1], 1 }

</bundles_post_ra>
